<compile_context>
chip_gen: v7x
topology: tpu7x:2x2x1
jax: 0.10.0
libtpu: 0.0.40
codegen_flags: <defaults>
</compile_context>

<pallas_src>
import jax
import jax.numpy as jnp
from jax import lax
from jax.experimental import pallas as pl
from jax.experimental.pallas import tpu as pltpu

N_EMBD = 384
BLOCK_SIZE = 128  # max sequence length the causal mask supports (as in PyTorch)


def head_kernel(x_ref, w_ref, o_ref):
    # x_ref block: (Bt, T, C) f32; w_ref: (C, 3H) bf16; o_ref block: (Bt, T, H) f32
    Bt, T, C = x_ref.shape
    H = w_ref.shape[1] // 3

    # Fused QKV projection: single (Bt*T, C) @ (C, 3H) bf16 matmul, f32 accum.
    x = x_ref[...].reshape(Bt * T, C).astype(jnp.bfloat16)
    qkv = jnp.dot(x, w_ref[...], preferred_element_type=jnp.float32)
    qkv = qkv.reshape(Bt, T, 3 * H)

    scale = jnp.float32(H) ** -0.5
    q = (qkv[:, :, 0:H] * scale).astype(jnp.bfloat16)          # scale on (T,H), not (T,T)
    k = qkv[:, :, H:2 * H].astype(jnp.bfloat16)
    v = qkv[:, :, 2 * H:3 * H].astype(jnp.bfloat16)

    # Attention scores: contract on the last (head) dim of both operands, so no
    # explicit transpose is materialized (keeps the XLU slot free).
    wei = jnp.einsum('btd,bsd->bts', q, k,
                     preferred_element_type=jnp.float32)       # (Bt, T, T) f32

    # Causal (tril) mask: built once, broadcast across the Bt batch tile.
    row = lax.broadcasted_iota(jnp.int32, (T, T), 0)
    col = lax.broadcasted_iota(jnp.int32, (T, T), 1)
    mask = (col <= row)[None, :, :]
    wei = jnp.where(mask, wei, -jnp.inf)

    # Numerically stable softmax, all elementwise math in f32 (v5e-friendly).
    wei = wei - jnp.max(wei, axis=-1, keepdims=True)
    p = jnp.exp(wei)
    denom = jnp.sum(p, axis=-1, keepdims=True)                 # (Bt, T, 1)

    # Dropout on p: identity (eval mode).

    # PV matmul in bf16 / f32-accum, then normalize the (Bt, T, H) output
    # (fewer elements than normalizing the (Bt, T, T) probabilities).
    out = jnp.einsum('bts,bsd->btd', p.astype(jnp.bfloat16), v,
                     preferred_element_type=jnp.float32)       # (Bt, T, H) f32
    o_ref[...] = out * pl.reciprocal(denom, approx=True)


def head_forward(x, wk, wq, wv, *, block_b=None):
    """x: (B, T, C) f32; wk/wq/wv: (C, H) f32 (= nn.Linear.weight.T). -> (B, T, H) f32."""
    B, T, C = x.shape
    H = wk.shape[1]
    assert T <= BLOCK_SIZE, "sequence length exceeds registered causal mask size"

    # One-time fusion of the three projection weights -> (C, 3H), bf16 for the MXU.
    # Slice order in the kernel is [q | k | v].
    w_qkv = jnp.concatenate([wq, wk, wv], axis=1).astype(jnp.bfloat16)

    if block_b is None:
        # Batch several samples per grid step, but keep >= 2 grid steps so both
        # TensorCores on a v7x chip get work (harmless on v5e/v6e).
        block_b = max(1, B // 2)
    while B % block_b:
        block_b -= 1
    grid = (B // block_b,)

    return pl.pallas_call(
        head_kernel,
        out_shape=jax.ShapeDtypeStruct((B, T, H), jnp.float32),
        grid_spec=pltpu.PrefetchScalarGridSpec(
            num_scalar_prefetch=0,
            grid=grid,
            in_specs=[
                pl.BlockSpec((block_b, T, C), lambda b: (b, 0, 0)),
                pl.BlockSpec((C, 3 * H), lambda b: (0, 0)),
            ],
            out_specs=pl.BlockSpec((block_b, T, H), lambda b: (b, 0, 0)),
        ),
        compiler_params=pltpu.CompilerParams(
            dimension_semantics=("parallel",)),
    )(x, w_qkv)


def head_reference(x, wk, wq, wv):
    """Pure-JAX f32 reference mirroring the PyTorch forward (eval mode)."""
    k = x @ wk
    q = x @ wq
    v = x @ wv
    wei = (q @ jnp.swapaxes(k, -2, -1)) * (k.shape[-1] ** -0.5)
    T = x.shape[1]
    mask = jnp.tril(jnp.ones((T, T), dtype=bool))
    wei = jnp.where(mask, wei, -jnp.inf)
    wei = jax.nn.softmax(wei, axis=-1)
    return wei @ v


if __name__ == "__main__":
    B, T, C = 4, 16, N_EMBD
    head_size = 64

    key = jax.random.PRNGKey(0)
    kx, kk, kq, kv = jax.random.split(key, 4)

    x = jax.random.normal(kx, (B, T, C), dtype=jnp.float32)
    # deterministic init mimicking nn.Linear's uniform(-1/sqrt(C), 1/sqrt(C)),
    # stored pre-transposed as (C, head_size)
    bound = 1.0 / (C ** 0.5)
    wk = jax.random.uniform(kk, (C, head_size), jnp.float32, -bound, bound)
    wq = jax.random.uniform(kq, (C, head_size), jnp.float32, -bound, bound)
    wv = jax.random.uniform(kv, (C, head_size), jnp.float32, -bound, bound)

    out = head_forward(x, wk, wq, wv)
    out = jax.block_until_ready(out)

    ref = head_reference(x, wk, wq, wv)
    assert out.shape == (B, T, head_size)
    # bf16 MXU inputs (with f32 accumulation) -> allow a few 1e-3 of error.
    assert jnp.allclose(out, ref, atol=2e-2, rtol=2e-2), "mismatch vs reference"

    print("KERNEL_OK")
</pallas_src>

<mosaic_0001>
module attributes {stable_mosaic.version = 11 : i64} {
  func.func @head_kernel(%arg0: i32, %arg1: memref<2x16x384xf32, #tpu.memory_space<vmem>>, %arg2: memref<384x192xbf16, #tpu.memory_space<vmem>>, %arg3: memref<2x16x64xf32, #tpu.memory_space<vmem>>) attributes {dimension_semantics = [#tpu.dimension_semantics<parallel>], iteration_bounds = array<i64: 2>, scalar_prefetch = 0 : i64, scratch_operands = 0 : i64, tpu.core_type = #tpu.core_type<tc>, window_params = [{transform_indices = @transform_0, window_bounds = array<i64: 2, 16, 384>}, {pipeline_mode = #tpu.pipeline_mode<synchronous>, transform_indices = @transform_1, window_bounds = array<i64: 384, 192>}, {transform_indices = @transform_2, window_bounds = array<i64: 2, 16, 64>}]} {
    %c0 = arith.constant 0 : index
    %c0_0 = arith.constant 0 : index
    %c0_1 = arith.constant 0 : index
    %0 = vector.load %arg1[%c0, %c0_0, %c0_1] : memref<2x16x384xf32, #tpu.memory_space<vmem>>, vector<2x16x384xf32>
    %1 = vector.shape_cast %0 : vector<2x16x384xf32> to vector<32x384xf32>
    %2 = arith.truncf %1 : vector<32x384xf32> to vector<32x384xbf16>
    %c0_2 = arith.constant 0 : index
    %c0_3 = arith.constant 0 : index
    %3 = vector.load %arg2[%c0_2, %c0_3] : memref<384x192xbf16, #tpu.memory_space<vmem>>, vector<384x192xbf16>
    %cst = arith.constant dense<0.000000e+00> : vector<32x192xf32>
    %4 = tpu.matmul %2, %3, %cst {dimension_numbers = #tpu.dot_dimension_numbers<[1], [0], [0], [1], [0, 0, 1, 1], [], []>} : vector<32x384xbf16>, vector<384x192xbf16>, vector<32x192xf32> -> vector<32x192xf32>
    %5 = vector.shape_cast %4 : vector<32x192xf32> to vector<2x16x192xf32>
    %cst_4 = arith.constant 6.400000e+01 : f32
    %cst_5 = arith.constant -5.000000e-01 : f32
    %6 = math.powf %cst_4, %cst_5 : f32
    %7 = vector.extract_strided_slice %5 {offsets = [0, 0, 0], sizes = [2, 16, 64], strides = [1, 1, 1]} : vector<2x16x192xf32> to vector<2x16x64xf32>
    %8 = vector.broadcast %6 : f32 to vector<2x16x64xf32>
    %9 = arith.mulf %7, %8 : vector<2x16x64xf32>
    %10 = arith.truncf %9 : vector<2x16x64xf32> to vector<2x16x64xbf16>
    %11 = vector.extract_strided_slice %5 {offsets = [0, 0, 64], sizes = [2, 16, 64], strides = [1, 1, 1]} : vector<2x16x192xf32> to vector<2x16x64xf32>
    %12 = arith.truncf %11 : vector<2x16x64xf32> to vector<2x16x64xbf16>
    %13 = vector.extract_strided_slice %5 {offsets = [0, 0, 128], sizes = [2, 16, 64], strides = [1, 1, 1]} : vector<2x16x192xf32> to vector<2x16x64xf32>
    %14 = arith.truncf %13 : vector<2x16x64xf32> to vector<2x16x64xbf16>
    "tpu.trace_start"() <{level = 10 : i32, message = "btd,bsd->bts"}> : () -> ()
    %cst_6 = arith.constant dense<0.000000e+00> : vector<2x16x16xf32>
    %15 = tpu.matmul %10, %12, %cst_6 {dimension_numbers = #tpu.dot_dimension_numbers<[2], [2], [1], [1], [0, 0, 0, 1, 1, 1], [0], [0]>} : vector<2x16x64xbf16>, vector<2x16x64xbf16>, vector<2x16x16xf32> -> vector<2x16x16xf32>
    "tpu.trace_stop"() : () -> ()
    %16 = tpu.iota {dimensions = array<i32: 0>} : vector<16x16xi32>
    %17 = tpu.iota {dimensions = array<i32: 1>} : vector<16x16xi32>
    %18 = arith.cmpi sle, %17, %16 : vector<16x16xi32>
    %19 = vector.shape_cast %18 : vector<16x16xi1> to vector<1x16x16xi1>
    %cst_7 = arith.constant 0xFF800000 : f32
    %20 = vector.shape_cast %19 : vector<1x16x16xi1> to vector<1x16x16xi1>
    %21 = vector.broadcast %20 : vector<1x16x16xi1> to vector<2x16x16xi1>
    %22 = vector.broadcast %cst_7 : f32 to vector<2x16x16xf32>
    %23 = arith.select %21, %15, %22 : vector<2x16x16xi1>, vector<2x16x16xf32>
    %cst_8 = arith.constant dense<0xFF800000> : vector<2x16xf32>
    %24 = vector.multi_reduction <maximumf>, %23, %cst_8 [2] : vector<2x16x16xf32> to vector<2x16xf32>
    %25 = vector.shape_cast %24 : vector<2x16xf32> to vector<2x16x1xf32>
    %26 = vector.broadcast %25 : vector<2x16x1xf32> to vector<2x16x16xf32>
    %27 = arith.subf %23, %26 : vector<2x16x16xf32>
    %28 = math.exp %27 : vector<2x16x16xf32>
    %cst_9 = arith.constant dense<0.000000e+00> : vector<2x16xf32>
    %29 = vector.multi_reduction <add>, %28, %cst_9 [2] : vector<2x16x16xf32> to vector<2x16xf32>
    %30 = vector.shape_cast %29 : vector<2x16xf32> to vector<2x16x1xf32>
    %31 = arith.truncf %28 : vector<2x16x16xf32> to vector<2x16x16xbf16>
    "tpu.trace_start"() <{level = 10 : i32, message = "bts,bsd->btd"}> : () -> ()
    %cst_10 = arith.constant dense<0.000000e+00> : vector<2x16x64xf32>
    %32 = tpu.matmul %31, %14, %cst_10 {dimension_numbers = #tpu.dot_dimension_numbers<[2], [1], [1], [2], [0, 0, 0, 1, 1, 2], [0], [0]>} : vector<2x16x16xbf16>, vector<2x16x64xbf16>, vector<2x16x64xf32> -> vector<2x16x64xf32>
    "tpu.trace_stop"() : () -> ()
    %33 = tpu.reciprocal %30 {approx = true} : vector<2x16x1xf32> -> vector<2x16x1xf32>
    %34 = vector.broadcast %33 : vector<2x16x1xf32> to vector<2x16x64xf32>
    %35 = arith.mulf %32, %34 : vector<2x16x64xf32>
    %c0_11 = arith.constant 0 : index
    %c0_12 = arith.constant 0 : index
    %c0_13 = arith.constant 0 : index
    %36 = vector.load %arg3[%c0_11, %c0_12, %c0_13] : memref<2x16x64xf32, #tpu.memory_space<vmem>>, vector<2x16x64xf32>
    tpu.vector_store %arg3[%c0_11, %c0_12, %c0_13], %35 {strides = array<i32>} : memref<2x16x64xf32, #tpu.memory_space<vmem>>, vector<2x16x64xf32>,
    return
  }
  func.func @transform_0(%arg0: i32) -> (i32, i32, i32) {
    %c0_i32 = arith.constant 0 : i32
    %c0_i32_0 = arith.constant 0 : i32
    %c0_i32_1 = arith.constant 0 : i32
    return %arg0, %c0_i32, %c0_i32_0 : i32, i32, i32
  }
  func.func @transform_1(%arg0: i32) -> (i32, i32) {
    %c0_i32 = arith.constant 0 : i32
    %c0_i32_0 = arith.constant 0 : i32
    %c0_i32_1 = arith.constant 0 : i32
    return %c0_i32, %c0_i32_0 : i32, i32
  }
  func.func @transform_2(%arg0: i32) -> (i32, i32, i32) {
    %c0_i32 = arith.constant 0 : i32
    %c0_i32_0 = arith.constant 0 : i32
    %c0_i32_1 = arith.constant 0 : i32
    return %arg0, %c0_i32, %c0_i32_0 : i32, i32, i32
  }
}

</mosaic_0001>

<bundles_post_ra>
// kernel: tpu_custom_call.1
= control target key start
LH: loop header
LB: loop body
LE: loop exit
PB: predicated region body
PF: predicated region fallthrough
CT: control target
= control target key end

     0   :  { %7 = vsyncpa [#allocation3], 0  ;;  %s1535_s0 = inlined_call_operand.vmem [shape: f32[4,16,384], index: 0, kind: input, shape index: {}]   ;;  %s1536_s1 = inlined_call_operand.vmem [shape: bf16[384,192], index: 1, kind: input, shape index: {}]   ;;  %s1537_s2 = inlined_call_operand.hbm [shape: f32[4,16,64], index: 2, kind: output, shape index: {}]  }
   0x1   :  { %9 = vsyncpa [#allocation3 + $0x1], 0  ;;  %s1230_s9 = smov 0   ;;  %s1232_s10 = smov 0  }
   0x2   :  { %s1234_s11 = smov 0   ;;  %s1236_s12 = smov 0  }
   0x3 LB: > { %s1251_s13 = sadd.s32 4294967295, %s1206_s12   ;;  %s903_s14 = sadd.s32 4294967294, %s1206_s12   ;;  %s1206_s12 = sphi %s1236_s12, %s1543_s12   ;;  %s1202_s11 = sphi %s1234_s11, %s1542_s11   ;;  %s1198_s10 = sphi %s1232_s10, %s1541_s10   ;;  %s1194_s9 = sphi %s1230_s9, %s1540_s9  }
   0x4   : > { %s1255_s15 = sadd.s32 1, %s1206_s12   ;;  %s69_s16 = sadd.s32 1, %s1202_s11 }
   0x5   : > { %s66_s17 = ssub.s32 %s1206_s12, %s1255_s15  ;;  %p79_p0 = scmp.ne.s32.totalorder %s1202_s11, %s1198_s10 }
   0x6   : > { %p67_p1 = scmp.eq.s32.totalorder %s66_s17, 0  ;;  %p80_p2 = scmp.eq.s32.totalorder %s1251_s13, 1 }
   0x7   : > { %p85_p3 = scmp.ne.s32.totalorder %s1198_s10, %s1194_s9  ;;  %p86_p4 = scmp.eq.s32.totalorder %s903_s14, 1 }
   0x8   : > { %s1266_s18 = scalar_select %p67_p1, %s1202_s11, %s69_s16  }
   0x9   : > { %p1268_p5 = por %p80_p2, %p79_p0  ;;  %p1272_p6 = por %p86_p4, %p85_p3 }
   0xa   : > { %p906_p7 = scmp.ge.s32.totalorder %s1206_s12, 1  ;;  %p117_p8 = scmp.lt.s32.totalorder %s1206_s12, 3 }
   0xc   : > { %p118_p9 = pnand %p906_p7, %p117_p8 }
   0xd   : > { %v1056_v0 = vld [vmem:[%s1536_s1 + $0x4] ss:$8 sps:$4 sm:$0xff] (!%p118_p9)   ;;  %v1058_v1 = vld [vmem:[%s1536_s1] ss:$8 sps:$4 sm:$0xff] (!%p118_p9)   ;;  %v1208_v2 = vmov (!%p118_p9), 0   ;;  %s908_s6 = sshll.u32 (!%p118_p9), %s1251_s13, 1 }
   0xe   : > { %121 = sbr.rel (%p118_p9) target bundleno = 1035 (0x40b), region = 28  ;;  %540 = vmatprep.mubr.bf16.mxu1 (!%p118_p9), %v1208_v2  ;;  %455 = vmatprep.subr.bf16.mxu0 (!%p118_p9), %v1056_v0  ;;  %v1059_v3 = vld [vmem:[%s1536_s1 + $0x14] ss:$8 sps:$4 sm:$0xff] (!%p118_p9)   ;;  %v1061_v4 = vld [vmem:[%s1536_s1 + $0x10] ss:$8 sps:$4 sm:$0xff] (!%p118_p9)   ;;  %p141_p10 = scmp.lt.s32.totalorder (!%p118_p9), %s908_s6, 3 }
   0xf   : > { %456 = vmatpush1.bf16.msra.mxu0 (!%p118_p9), %v1058_v1  ;;  %v1062_v5 = vld [vmem:[%s1536_s1 + $0x24] ss:$8 sps:$4 sm:$0xff] (!%p118_p9)   ;;  %v1064_v6 = vld [vmem:[%s1536_s1 + $0x20] ss:$8 sps:$4 sm:$0xff] (!%p118_p9)   ;;  %v1065_v7 = vld [vmem:[%s1536_s1 + $0x34] ss:$8 sps:$4 sm:$0xff] (!%p118_p9)  }
  0x10   : > { %457 = vmatprep.subr.bf16.mxu0 (!%p118_p9), %v1059_v3  ;;  %v1067_v8 = vld [vmem:[%s1536_s1 + $0x30] ss:$8 sps:$4 sm:$0xff] (!%p118_p9)   ;;  %v1080_v9 = vld [vmem:[%s1536_s1 + $0x104] ss:$8 sps:$4 sm:$0xff] (!%p118_p9)   ;;  %v1082_v10 = vld [vmem:[%s1536_s1 + $0x100] ss:$8 sps:$4 sm:$0xff] (!%p118_p9)  }
  0x11   : > { %v1068_v11 = vld [vmem:[%s1536_s1 + $0x44] ss:$8 sps:$4 sm:$0xff] (!%p118_p9)   ;;  %508 = vmatprep.subr.bf16.mxu1 (!%p118_p9), %v1080_v9  ;;  %v1086_v12 = vld [vmem:[%s1536_s1 + $0x114] ss:$8 sps:$4 sm:$0xff] (!%p118_p9)   ;;  %v1088_v13 = vld [vmem:[%s1536_s1 + $0x110] ss:$8 sps:$4 sm:$0xff] (!%p118_p9)  }
  0x12   : > { %509 = vmatpush1.bf16.msra.mxu1 (!%p118_p9), %v1082_v10  ;;  %v1070_v14 = vld [vmem:[%s1536_s1 + $0x40] ss:$8 sps:$4 sm:$0xff] (!%p118_p9)   ;;  %v1071_v15 = vld [vmem:[%s1536_s1 + $0x54] ss:$8 sps:$4 sm:$0xff] (!%p118_p9)   ;;  %v1092_v16 = vld [vmem:[%s1536_s1 + $0x124] ss:$8 sps:$4 sm:$0xff] (!%p118_p9)  }
  0x13   : > { %458 = vmatpush1.bf16.msra.mxu0 (!%p118_p9), %v1061_v4  ;;  %510 = vmatprep.subr.bf16.mxu1 (!%p118_p9), %v1086_v12  ;;  %v1094_v17 = vld [vmem:[%s1536_s1 + $0x120] ss:$8 sps:$4 sm:$0xff] (!%p118_p9)   ;;  %v1073_v18 = vld [vmem:[%s1536_s1 + $0x50] ss:$8 sps:$4 sm:$0xff] (!%p118_p9)   ;;  %v1098_v19 = vld [vmem:[%s1536_s1 + $0x134] ss:$8 sps:$4 sm:$0xff] (!%p118_p9)  }
  0x14   : > { %459 = vmatprep.subr.bf16.mxu0 (!%p118_p9), %v1062_v5  ;;  %v1074_v20 = vld [vmem:[%s1536_s1 + $0x64] ss:$8 sps:$4 sm:$0xff] (!%p118_p9)   ;;  %v1100_v21 = vld [vmem:[%s1536_s1 + $0x130] ss:$8 sps:$4 sm:$0xff] (!%p118_p9)   ;;  %v1076_v22 = vld [vmem:[%s1536_s1 + $0x60] ss:$8 sps:$4 sm:$0xff] (!%p118_p9)  }
  0x15   : > { %v1104_v23 = vld [vmem:[%s1536_s1 + $0x144] ss:$8 sps:$4 sm:$0xff]   ;;  %s1545_s6 = smov (!%p141_p10, %s908_s6), 3  ;;  %v1077_v24 = vld [vmem:[%s1536_s1 + $0x74] ss:$8 sps:$4 sm:$0xff]   ;;  %vm1210_vm0 = vmmov 0  }
  0x16   : > { %511 = vmatpush1.bf16.msra.mxu1 %v1088_v13  ;;  %v1106_v25 = vld [vmem:[%s1536_s1 + $0x140] ss:$8 sps:$4 sm:$0xff]   ;;  %v1079_v26 = vld [vmem:[%s1536_s1 + $0x70] ss:$8 sps:$4 sm:$0xff]   ;;  %v1110_v27 = vld [vmem:[%s1536_s1 + $0x154] ss:$8 sps:$4 sm:$0xff]  }
  0x17   : > { %460 = vmatpush1.bf16.msra.mxu0 %v1064_v6  ;;  %512 = vmatprep.subr.bf16.mxu1 %v1092_v16  ;;  %s1010_s17 = smul.u32 48, %s1545_s6  ;;  %v1083_v28 = vld [vmem:[%s1536_s1 + $0x84] ss:$8 sps:$4 sm:$0xff]   ;;  %v1112_v29 = vld [vmem:[%s1536_s1 + $0x150] ss:$8 sps:$4 sm:$0xff]   ;;  %vm574_vm1 = vcmask 523264  }
  0x18   : > { %461 = vmatprep.subr.bf16.mxu0 %v1065_v7  ;;  %v1085_v30 = vld [vmem:[%s1536_s1 + $0x80] ss:$8 sps:$4 sm:$0xff]   ;;  %v1116_v31 = vld [vmem:[%s1536_s1 + $0x164] ss:$8 sps:$4 sm:$0xff]   ;;  %v1089_v32 = vld [vmem:[%s1536_s1 + $0x94] ss:$8 sps:$4 sm:$0xff]  }
  0x19   : > { %s1376_s30 = scalar_lea.vmem %s1535_s0, %s1010_s17  ;;  %v1118_v35 = vld [vmem:[%s1536_s1 + $0x160] ss:$8 sps:$4 sm:$0xff]   ;;  %v1091_v37 = vld [vmem:[%s1536_s1 + $0x90] ss:$8 sps:$4 sm:$0xff]   ;;  %v1122_v38 = vld [vmem:[%s1536_s1 + $0x174] ss:$8 sps:$4 sm:$0xff]  }
  0x1a   : > { %513 = vmatpush1.bf16.msra.mxu1 %v1094_v17  ;;  %v150_v33 = vld [vmem:[%s1376_s30 + $0x8] sm:$0xff]  ;;  %v153_v34 = vld [vmem:[%s1376_s30 + $0x20] sm:$0xff]  ;;  %v1124_v40 = vld [vmem:[%s1536_s1 + $0x170] ss:$8 sps:$4 sm:$0xff]   ;;  %vm687_vm3 = vcmask 130048   ;;  %s137_s6 = sand.u32 1, %s1198_s10  }
  0x1b   : > { %462 = vmatpush1.bf16.msra.mxu0 %v1067_v8  ;;  %514 = vmatprep.subr.bf16.mxu1 %v1098_v19  ;;  %v162_v36 = vpack.c.bf16 %v153_v34, %v150_v33  ;;  %v1095_v39 = vld [vmem:[%s1536_s1 + $0xa4] ss:$8 sps:$4 sm:$0xff]   ;;  %v151_v41 = vld [vmem:[%s1376_s30 + $0x10] sm:$0xff]  ;;  %v1097_v43 = vld [vmem:[%s1536_s1 + $0xa0] ss:$8 sps:$4 sm:$0xff]   ;;  %s907_s29 = sshll.u32 %s137_s6, 5 }
  0x1c   : > { %463 = vmatprep.subr.bf16.mxu0 %v1068_v11  ;;  %v154_v42 = vld [vmem:[%s1376_s30 + $0x28] sm:$0xff]  ;;  %v1101_v44 = vld [vmem:[%s1536_s1 + $0xb4] ss:$8 sps:$4 sm:$0xff]   ;;  %v1103_v46 = vld [vmem:[%s1536_s1 + $0xb0] ss:$8 sps:$4 sm:$0xff]   ;;  %v1209_v11 = vmov 0.0  }
  0x1d   : > { %487 = vmatprep.mubr.bf16.mxu0 %v162_v36  ;;  %v163_v45 = vpack.c.bf16 %v154_v42, %v151_v41  ;;  %v1107_v47 = vld [vmem:[%s1536_s1 + $0xc4] ss:$8 sps:$4 sm:$0xff]   ;;  %v160_v49 = vld [vmem:[%s1376_s30 + $0x58] sm:$0xff]  ;;  %v1109_v50 = vld [vmem:[%s1536_s1 + $0xc0] ss:$8 sps:$4 sm:$0xff]   ;;  %v672_v42 = vlaneseq  ;;  %s139_s3 = scalar_lea.vmem [#allocation2], %s907_s29 }
  0x1e   : > { %515 = vmatpush1.bf16.msra.mxu1 %v1100_v21  ;;  %v157_v48 = vld [vmem:[%s1376_s30 + $0x40] sm:$0xff]  ;;  %v1113_v51 = vld [vmem:[%s1536_s1 + $0xd4] ss:$8 sps:$4 sm:$0xff]   ;;  %v1115_v53 = vld [vmem:[%s1536_s1 + $0xd0] ss:$8 sps:$4 sm:$0xff]   ;;  %s841_s4 = sshll.u32 %s139_s3, 4  ;;  %s1483_s4 = int_to_ptr.vmem [resolvable:$true] %s841_s4 }
  0x1f   : > { %464 = vmatpush1.bf16.msra.mxu0 %v1070_v14  ;;  %516 = vmatprep.subr.bf16.mxu1 %v1104_v23  ;;  %v166_v52 = vpack.c.bf16 %v160_v49, %v157_v48  ;;  %v1119_v54 = vld [vmem:[%s1536_s1 + $0xe4] ss:$8 sps:$4 sm:$0xff]   ;;  %v1121_v55 = vld [vmem:[%s1536_s1 + $0xe0] ss:$8 sps:$4 sm:$0xff]   ;;  %v1125_v56 = vld [vmem:[%s1536_s1 + $0xf4] ss:$8 sps:$4 sm:$0xff]  }
  0x20   : > { %465 = vmatprep.subr.bf16.mxu0 %v1071_v15  ;;  %v1127_v57 = vld [vmem:[%s1536_s1 + $0xf0] ss:$8 sps:$4 sm:$0xff]   ;;  %v149_v58 = vld [vmem:[%s1376_s30] sm:$0xff]  ;;  %v158_v1 = vld [vmem:[%s1376_s30 + $0x48] sm:$0xff]  ;;  %s969_s5 = sshll.u32 %s1251_s13, 9  ;;  %s1494_s13 = scalar_lea.sflag [#allocation3], %s137_s6 }
  0x21   : > { %v152_v59 = vld [vmem:[%s1376_s30 + $0x18] sm:$0xff]  ;;  %v159_v61 = vld [vmem:[%s1376_s30 + $0x50] sm:$0xff]  ;;  %s1489_s14 = scalar_lea.hbm %s1537_s2, %s969_s5  ;;  %s1144_s16 = scalar_lea.vmem %s1483_s4, 512 }
  0x22   : > { %517 = vmatpush1.bf16.msra.mxu1 %v1106_v25  ;;  %v156_v60 = vld [vmem:[%s1376_s30 + $0x38] sm:$0xff]  ;;  %v161_v62 = vpack.c.bf16 %v152_v59, %v149_v58  ;;  %v155_v0 = vld [vmem:[%s1376_s30 + $0x30] sm:$0xff]  ;;  %s1211_s30 = smov 64   ;;  %p1145_p11 = scmp.ne.s32.totalorder %s1483_s4, %s1144_s16 }
  0x23   : > { %466 = vmatpush1.bf16.msra.mxu0 %v1073_v18  ;;  %518 = vmatprep.subr.bf16.mxu1 %v1110_v27  ;;  %v165_v63 = vpack.c.bf16 %v159_v61, %v156_v60  ;;  %s1212_s17 = smov [#allocation2]  }
  0x24   : > { %467 = vmatprep.subr.bf16.mxu0 %v1074_v20  ;;  %p1146_p12 = pnand %p1145_p11, %p1268_p5  ;;  %s1148_s21 = sshll.u32 %s1212_s17, 4  ;;  %s1149_s21 = int_to_ptr.vmem [resolvable:$false] %s1148_s21 }
  0x25   : > { %s1150_s22 = scalar_lea.vmem %s1149_s21, 1024  ;;  %p1151_p0 = scmp.lt.s32.totalorder %s1483_s4, %s1149_s21 }
  0x26   : > { %519 = vmatpush1.bf16.msra.mxu1 %v1112_v29  ;;  %p1147_p13 = pneg %p1146_p12  ;;  %p1152_p1 = scmp.lt.s32.totalorder %s1150_s22, %s1144_s16 }
  0x27   : > { %468 = vmatpush1.bf16.msra.mxu0 %v1076_v22  ;;  %520 = vmatprep.subr.bf16.mxu1 %v1116_v31 }
  0x28   : > { %469 = vmatprep.subr.bf16.mxu0 %v1077_v24  ;;  %p1153_p2 = por %p1152_p1, %p1151_p0 }
  0x2a   : > { %521 = vmatpush1.bf16.msra.mxu1 %v1118_v35  ;;  %p1154_p3 = pnand %p1153_p2, %p1147_p13 }
  0x2b   : > { %470 = vmatpush1.bf16.msra.mxu0 %v1079_v26  ;;  %522 = vmatprep.subr.bf16.mxu1 %v1122_v38 }
  0x2c   : > { %471 = vmatprep.subr.bf16.mxu0 %v1083_v28 }
  0x2e   : > { %523 = vmatpush1.bf16.msra.mxu1 %v1124_v40 }
  0x2f   : > { %472 = vmatpush1.bf16.msra.mxu0 %v1085_v30  ;;  %978 = vmatprep.subr.bf16.mxu1 %v1209_v11 }
  0x30   : > { %473 = vmatprep.subr.bf16.mxu0 %v1089_v32 }
  0x31   : > { %541 = vmatmul.mubr.bf16.vlgmr.msra.gmra.mrb[0].mxu1 %v163_v45 }
  0x32   : > { %550 = vmatprep.mubr.bf16.mxu1 %v1208_v2  ;;  %v164_v2 = vpack.c.bf16 %v158_v1, %v155_v0 }
  0x33   : > { %474 = vmatpush1.bf16.msra.mxu0 %v1091_v37 }
  0x34   : > { %475 = vmatprep.subr.bf16.mxu0 %v1095_v39 }
  0x37   : > { %476 = vmatpush1.bf16.msra.mxu0 %v1097_v43  ;;  %v673_v43 = vshrl.u32 %v672_v42, 7 }
  0x38   : > { %477 = vmatprep.subr.bf16.mxu0 %v1101_v44  ;;  %v676_v44 = vand.u32 127, %v672_v42 }
  0x39   : > { %551 = vmatmul.mubr.bf16.gmra.mrb[4].mxu1 %v166_v52  ;;  %v674_v45 = vadd.s32 8, %v673_v43 }
  0x3a   : > { %980 = vmatprep.mubr.msk.bf16.mxu1 %vm1210_vm0, %v1209_v11  ;;  %vm677_vm2 = vcmp.le.s32.totalorder %v676_v44, %v673_v43 }
  0x3b   : > { %478 = vmatpush1.bf16.msra.mxu0 %v1103_v46  ;;  %vm678_vm4 = vcmp.le.s32.totalorder %v676_v44, %v674_v45 }
  0x3c   : > { %479 = vmatprep.subr.bf16.mxu0 %v1107_v47 }
  0x3f   : > { %480 = vmatpush1.bf16.msra.mxu0 %v1109_v50 }
  0x40   : > { %481 = vmatprep.subr.bf16.mxu0 %v1113_v51 }
  0x43   : > { %482 = vmatpush1.bf16.msra.mxu0 %v1115_v53 }
  0x44   : > { %483 = vmatprep.subr.bf16.mxu0 %v1119_v54 }
  0x47   : > { %484 = vmatpush1.bf16.msra.mxu0 %v1121_v55 }
  0x48   : > { %485 = vmatprep.subr.bf16.mxu0 %v1125_v56 }
  0x4b   : > { %486 = vmatpush1.bf16.msra.mxu0 %v1127_v57 }
  0x4e   : > { %488 = vmatmul.mubr.bf16.vlgmr.msra.gmra.mrb[0].mxu0 %v161_v62 }
  0x4f   : > { %497 = vmatprep.mubr.bf16.mxu0 %v165_v63 }
  0x56   : > { %498 = vmatmul.mubr.bf16.gmra.mrb[4].mxu0 %v164_v2 }
 0x104   : > { %v542_v3 = vpop.f32.mrb[0].mxu1 }
 0x105   : > { %v544_v4 = vpop.f32.mrb[1].mxu1 }
 0x106   : > { %v546_v5 = vpop.f32.mrb[2].mxu1 }
 0x107   : > { %v548_v6 = vpop.f32.mrb[3].mxu1 }
 0x10c   : > { %v552_v7 = vpop.f32.mrb[4].mxu1 }
 0x10d   : > { %v554_v8 = vpop.f32.mrb[5].mxu1 }
 0x10e   : > { %v556_v9 = vpop.f32.mrb[6].mxu1 }
 0x10f   : > { %v558_v10 = vpop.f32.mrb[7].mxu1 }
 0x121   : > { %v489_v12 = vpop.f32.mrb[0].mxu0 }
 0x122   : > { %v543_v13 = vadd.f32 %v542_v3, %v489_v12  ;;  %v491_v14 = vpop.f32.mrb[1].mxu0 }
 0x123   : > { %v545_v15 = vadd.f32 %v544_v4, %v491_v14  ;;  %v493_v16 = vpop.f32.mrb[2].mxu0 }
 0x124   : > { %v547_v17 = vadd.f32 %v546_v5, %v493_v16  ;;  %v495_v18 = vpop.f32.mrb[3].mxu0  ;;  %v561_v20 = vmul.f32 0.125, %v543_v13 }
 0x125   : > { %v549_v19 = vadd.f32 %v548_v6, %v495_v18 }
 0x126   : > { %v562_v21 = vmul.f32 0.125, %v547_v17  ;;  %v567_v22 = vpack.c.bf16 %v547_v17, %v543_v13 }
 0x127   : > { %v569_v23 = vpack.c.bf16 %v549_v19, %v545_v15 }
 0x128   : > { %v565_v24 = vpack.c.bf16 %v562_v21, %v561_v20  ;;  %572 = vrot.lane.b32.xlu0 %v567_v22, %s1211_s30 }
 0x129   : > { %v499_v25 = vpop.f32.mrb[4].mxu0 }
 0x12a   : > { %v553_v26 = vadd.f32 %v552_v7, %v499_v25  ;;  %v501_v27 = vpop.f32.mrb[5].mxu0 }
 0x12b   : > { %v1445_v28 = vadd.f32 %v554_v8, %v501_v27  ;;  %v503_v29 = vpop.f32.mrb[6].mxu0 }
 0x12c   : > { %v563_v30 = vmul.f32 0.125, %v553_v26  ;;  %v557_v31 = vadd.f32 %v556_v9, %v503_v29  ;;  %v505_v32 = vpop.f32.mrb[7].mxu0 }
 0x12d   : > { %v1447_v33 = vadd.f32 %v558_v10, %v505_v32 }
 0x12e   : > { %v564_v34 = vmul.f32 0.125, %v557_v31  ;;  %v568_v35 = vpack.c.bf16 %v557_v31, %v553_v26 }
 0x12f   : > { %v570_v36 = vpack.c.bf16 %v1447_v33, %v1445_v28 }
 0x130   : > { %v566_v37 = vpack.c.bf16 %v564_v34, %v563_v30  ;;  %623 = vrot.lane.b32.xlu0 %v568_v35, %s1211_s30 }
 0x19a   : > { %v573_v38 = vpop.permute.xlu0 %572 }
 0x19b   : > { %v579_v39 = vsel %vm574_vm1, %v573_v38, 0 }
 0x19c   : > { %979 = vmatpush3.bf16.xpose.msra.mxu1 %v579_v39 }
 0x19d   : > { %984 = vmatprep.subr.bf16.mxu1 %v1209_v11 }
 0x1a2   : > { %v624_v40 = vpop.permute.xlu0 %623 }
 0x1a3   : > { %v629_v41 = vsel %vm574_vm1, %v624_v40, 0  ;;  %981 = vmatmul.mubr.msk.bf16.vlgmr.msra.gmra.mrb[8].mxu1 %vm574_vm1, %v565_v24 }
 0x1a4   : > { %985 = vmatpush3.bf16.xpose.msra.mxu1 %v629_v41  ;;  %986 = vmatprep.mubr.msk.bf16.mxu1 %vm1210_vm0, %v1209_v11 }
 0x1a5   : > { %990 = vmatprep.subr.bf16.mxu1 %v1209_v11 }
 0x1ab   : > { %987 = vmatmul.mubr.msk.bf16.vlgmr.msra.gmra.mrb[12].mxu1 %vm574_vm1, %v566_v37 }
 0x1ac   : > { %991 = vmatpush3.bf16.msra.mxu1 %v569_v23  ;;  %992 = vmatprep.mubr.msk.bf16.mxu1 %vm1210_vm0, %v1209_v11 }
 0x1ad   : > { %996 = vmatprep.subr.bf16.mxu1 %v1209_v11 }
 0x276   : > { %v615_v46 = vpop.f32.mrb[8].mxu1 }
 0x277   : > { %v683_v47 = vsel %vm677_vm2, %v615_v46, -inf  ;;  %v982_v48 = vpop.f32.mrb[9].mxu1 }
 0x278   : > { %v618_v49 = vpop.f32.mrb[10].mxu1  ;;  %v688_v50 = vsel %vm687_vm3, %v683_v47, -inf }
 0x279   : > { %v684_v51 = vsel %vm678_vm4, %v618_v49, -inf  ;;  %689 = vmax.xlane.f32.xlu1 %v688_v50  ;;  %v983_v52 = vpop.f32.mrb[11].mxu1 }
 0x27a   : > { %v691_v53 = vsel %vm687_vm3, %v684_v51, -inf }
 0x27d   : > { %692 = vmax.xlane.f32.xlu1 %v691_v53 }
 0x27e   : > { %v665_v54 = vpop.f32.mrb[12].mxu1 }
 0x27f   : > { %v685_v55 = vsel %vm677_vm2, %v665_v54, -inf  ;;  %v988_v56 = vpop.f32.mrb[13].mxu1 }
 0x280   : > { %v668_v57 = vpop.f32.mrb[14].mxu1  ;;  %v694_v58 = vsel %vm687_vm3, %v685_v55, -inf }
 0x281   : > { %v686_v59 = vsel %vm678_vm4, %v668_v57, -inf  ;;  %695 = vmax.xlane.f32.xlu0 %v694_v58  ;;  %v989_v60 = vpop.f32.mrb[15].mxu1 }
 0x282   : > { %v697_v61 = vsel %vm687_vm3, %v686_v59, -inf }
 0x283   : > { %698 = vmax.xlane.f32.xlu1 %v697_v61 }
 0x306   : > { %v690_v62 = vpop.xlane.xlu1 %689 }
 0x307   : > { %v700_v63 = vsub.f32 %v683_v47, %v690_v62 }
 0x309   : > { %v704_v0 = vmul.f32 1.442695, %v700_v63 }
 0x30a   : > { %v693_v1 = vpop.xlane.xlu1 %692 }
 0x30b   : > { %1128 = vpow2.f32 %v704_v0  ;;  %v701_v2 = vsub.f32 %v684_v51, %v693_v1 }
 0x30d   : > { %v706_v3 = vmul.f32 1.442695, %v701_v2 }
 0x30e   : > { %v696_v4 = vpop.xlane.xlu0 %695 }
 0x30f   : > { %1130 = vpow2.f32 %v706_v3  ;;  %v702_v5 = vsub.f32 %v685_v55, %v696_v4 }
 0x310   : > { %v699_v6 = vpop.xlane.xlu1 %698 }
 0x311   : > { %v708_v7 = vmul.f32 1.442695, %v702_v5  ;;  %v703_v8 = vsub.f32 %v686_v59, %v699_v6 }
 0x313   : > { %1132 = vpow2.f32 %v708_v7  ;;  %v710_v9 = vmul.f32 1.442695, %v703_v8 }
 0x315   : > { %v1129_v10 = vpop.eup %1128  ;;  %1134 = vpow2.f32 %v710_v9 }
 0x316   : > { %v712_v12 = vsel %vm687_vm3, %v1129_v10, 0.0 }
 0x317   : > { %713 = vadd.xlane.f32.xlu1 %v712_v12 }
 0x319   : > { %v1131_v13 = vpop.eup %1130 }
 0x31a   : > { %v715_v14 = vsel %vm687_vm3, %v1131_v13, 0.0  ;;  %v724_v15 = vpack.c.bf16 %v1131_v13, %v1129_v10 }
 0x31b   : > { %716 = vadd.xlane.f32.xlu1 %v715_v14 }
 0x31c   : > { %993 = vmatmul.mubr.msk.bf16.vlgmr.msra.gmra.mrb[16].mxu1 %vm687_vm3, %v724_v15 }
 0x31d   : > { %v1133_v16 = vpop.eup %1132  ;;  %997 = vmatpush3.bf16.msra.mxu1 %v570_v36  ;;  %998 = vmatprep.mubr.msk.bf16.mxu1 %vm1210_vm0, %v1209_v11 }
 0x31e   : > { %v718_v17 = vsel %vm687_vm3, %v1133_v16, 0.0 }
 0x31f   : > { %v1135_v18 = vpop.eup %1134  ;;  %719 = vadd.xlane.f32.xlu1 %v718_v17 }
 0x320   : > { %v721_v19 = vsel %vm687_vm3, %v1135_v18, 0.0  ;;  %v725_v20 = vpack.c.bf16 %v1135_v18, %v1133_v16 }
 0x323   : > { %722 = vadd.xlane.f32.xlu1 %v721_v19 }
 0x324   : > { %999 = vmatmul.mubr.msk.bf16.vlgmr.msra.gmra.mrb[20].mxu1 %vm687_vm3, %v725_v20 }
 0x3a4   : > { %v714_v21 = vpop.xlane.xlu1 %713 }
 0x3a5   : > { %1136 = vrcp.f32 %v714_v21 }
 0x3a8   : > { %v717_v22 = vpop.xlane.xlu1 %716 }
 0x3a9   : > { %1138 = vrcp.f32 %v717_v22 }
 0x3ac   : > { %v720_v23 = vpop.xlane.xlu1 %719 }
 0x3ad   : > { %1140 = vrcp.f32 %v720_v23 }
 0x3af   : > { %v1137_v11 = vpop.eup %1136 }
 0x3b0   : > { %v723_v24 = vpop.xlane.xlu1 %722 }
 0x3b1   : > { %1142 = vrcp.f32 %v723_v24 }
 0x3b3   : > { %v1139_v28 = vpop.eup %1138 }
 0x3b7   : > { %v1141_v32 = vpop.eup %1140 }
 0x3bb   : > { %v1143_v36 = vpop.eup %1142 }
 0x3ef   : > { %v763_v25 = vpop.f32.mrb[16].mxu1 }
 0x3f0   : > { %v818_v26 = vmul.f32 %v1137_v11, %v763_v25  ;;  %v994_v27 = vpop.f32.mrb[17].mxu1 }
 0x3f1   : > { %v766_v29 = vpop.f32.mrb[18].mxu1 }
 0x3f2   : > { %822 = vst.msk [vmem:[%s139_s3] sm:$0xff] %vm574_vm1, %v818_v26  ;;  %v819_v30 = vmul.f32 %v1139_v28, %v766_v29  ;;  %v995_v31 = vpop.f32.mrb[19].mxu1 }
 0x3f4   : > { %823 = vst.msk [vmem:[%s139_s3 + $0x8] sm:$0xff] %vm574_vm1, %v819_v30 }
 0x3f7   : > { %v807_v33 = vpop.f32.mrb[20].mxu1 }
 0x3f8   : > { %v820_v34 = vmul.f32 %v1141_v32, %v807_v33  ;;  %v1000_v35 = vpop.f32.mrb[21].mxu1 }
 0x3f9   : > { %v810_v37 = vpop.f32.mrb[22].mxu1 }
 0x3fa   : > { %824 = vst.msk [vmem:[%s139_s3 + $0x10] sm:$0xff] %vm574_vm1, %v820_v34  ;;  %v821_v38 = vmul.f32 %v1143_v36, %v810_v37  ;;  %v1001_v39 = vpop.f32.mrb[23].mxu1 }
 0x3fc   : > { %825 = vst.msk [vmem:[%s139_s3 + $0x18] sm:$0xff] %vm574_vm1, %v821_v38 }
 0x3fd   : > { %1157 = shalt.err (!%p1154_p3)
}
 0x3fe   : > { %s1158_s23 = scalar_lea.hbm %s1489_s14, 512  ;;  %s1162_s26 = scalar_lea.hbm %s1537_s2, 1024 }
 0x3ff   : > { %p1159_p4 = scmp.ne.s32.totalorder %s1489_s14, %s1158_s23  ;;  %p1163_p9 = scmp.lt.u32.totalorder %s1489_s14, %s1537_s2 }
 0x400   : > { %p1164_p10 = scmp.lt.u32.totalorder %s1162_s26, %s1158_s23  ;;  %p1166_p12 = scmp.lt.u32.totalorder %s1158_s23, %s1489_s14 }
 0x401   : > { %p1160_p7 = pnand %p1159_p4, %p1268_p5 }
 0x402   : > { %p1165_p11 = por %p1164_p10, %p1163_p9 }
 0x403   : > { %p1161_p8 = pneg %p1160_p7 }
 0x404   : > { %p1167_p13 = por %p1166_p12, %p1165_p11 }
 0x406   : > { %p1168_p0 = pnand %p1167_p13, %p1161_p8 }
 0x408   : > { %1171 = shalt.err (!%p1168_p0)
}
 0x409   : > { %s1213_s30 = smov 128   ;;  %s1214_s6 = smov 8  }
 0x40a   : > { %1011 = dma.vmem_to_hbm [thread:$0]  (%p1268_p5), %s1483_s4, 512, %s1489_s14, %s1494_s13, %s1213_s30, %s1213_s30, %s1214_s6  }
 0x40b PF: > { %p1017_p1 = scmp.ge.s32.totalorder %s1206_s12, 2  ;;  %s856_s29 = sand.u32 1, %s1194_s9  }
 0x40c   : > { %s857_s3 = scalar_lea.sflag [#allocation3], %s856_s29 }
 0x40d   : > { %p1014_p2 = pnand %p1017_p1, %p1272_p6 }
 0x40f   : > { %1189 = dma.done.wait (!%p1014_p2), %s857_s3, 512  }
 0x410   : > { %1191 = vsyncadd (!%p1014_p2), %s857_s3, 4294966784  ;;  %p12_p3 = scmp.ge.s32.totalorder %s1255_s15, 4   ;;  %s1540_s9 = smov %s1198_s10 }
 0x411   : > { %s1541_s10 = smov %s1202_s11  ;;  %s1542_s11 = smov %s1266_s18 }
 0x412   : > { %s1543_s12 = smov %s1255_s15  ;;  %14 = sbr.rel (!%p12_p3) target bundleno = 3 (0x3), region = 63 }
 0x419   :  { %862 = vsyncpa [#allocation3], 1 }
 0x41a   :  { %864 = vsyncpa [#allocation3 + $0x1], 1 }

</bundles_post_ra>
